<compile_context>
chip_gen: v6e
topology: v6e:2x2x1
jax: 0.10.0
libtpu: 0.0.40
codegen_flags: <defaults>
</compile_context>

<pallas_src>
import functools

import jax
import jax.numpy as jnp
from jax.experimental import pallas as pl
from jax.experimental.pallas import tpu as pltpu


# ----------------------------- kernel bodies ------------------------------


def _cosine_loss_body(pred_ref, label_ref, weight_ref, out_ref, *, margin,
                      compute_dtype, accumulate):
    pred = pred_ref[...].astype(compute_dtype)
    # Compare labels in their native dtype (int8 / bf16 / f32): no full-block cast.
    is_pos = label_ref[...] == 1
    one = jnp.asarray(1.0, compute_dtype)
    zero = jnp.asarray(0.0, compute_dtype)
    m = jnp.asarray(margin, compute_dtype)
    loss = jnp.where(is_pos, one - pred, jnp.maximum(pred - m, zero))
    if weight_ref is not None:
        loss = loss * weight_ref[...].astype(compute_dtype)

    br, c = loss.shape
    # Fold the (block_rows, C) tile down to one (8, C) partial-sum slab.
    # The reshape only splits the major (sublane-group) dim -> layout-preserving,
    # and the axis-0 sum is pure VALU adds (f32 accumulate) hidden under the DMA.
    partial = jnp.sum(loss.reshape(br // 8, 8, c), axis=0, dtype=jnp.float32)

    if accumulate:
        # Resident f32 accumulator (single output block across the whole grid).
        @pl.when(pl.program_id(0) == 0)
        def _():
            out_ref[...] = jnp.zeros_like(out_ref)
        out_ref[...] += partial
    else:
        # Per-block partials; both v7x TensorCores stream independently.
        out_ref[...] = partial


def _cosine_loss_kernel(pred_ref, label_ref, out_ref, *, margin, compute_dtype,
                        accumulate):
    _cosine_loss_body(pred_ref, label_ref, None, out_ref, margin=margin,
                      compute_dtype=compute_dtype, accumulate=accumulate)


def _cosine_loss_kernel_weighted(pred_ref, label_ref, weight_ref, out_ref, *,
                                 margin, compute_dtype, accumulate):
    _cosine_loss_body(pred_ref, label_ref, weight_ref, out_ref, margin=margin,
                      compute_dtype=compute_dtype, accumulate=accumulate)


# ------------------------------- helpers ----------------------------------


def _round_up(x, m):
    return (x + m - 1) // m * m


def _device_kind():
    try:
        return jax.devices()[0].device_kind.lower()
    except Exception:  # pragma: no cover - defensive
        return ""


def _default_compute_dtype(pred_dtype):
    # bf16 VALUs exist on v6e/v7x; v5e (and older) keep the f32 compute path.
    if jnp.dtype(pred_dtype) == jnp.dtype(jnp.bfloat16):
        kind = _device_kind()
        if ("v6" in kind) or ("v7" in kind):
            return jnp.bfloat16
    return jnp.float32


def _use_multicore_partials():
    # v7x has 2 TensorCores per chip -> keep "parallel" grid + per-block partials.
    # Single-TC chips (v5e/v6e) use the resident accumulator instead.
    return "v7" in _device_kind()


def _pick_block_rows(n_rows, n_cols, stream_itemsizes, max_block_bytes):
    """Largest packing-aligned row-block whose widest-stream tile fits the budget."""
    # Sublane packing granularity of the narrowest stream: 8 rows for 4-byte
    # dtypes, 16 for 2-byte (bf16), 32 for 1-byte (int8).
    gran = 8 * (4 // min(stream_itemsizes))
    widest = max(stream_itemsizes)
    cap = max_block_bytes // (n_cols * widest)
    block_rows = max(gran, (cap // gran) * gran)
    # No point in blocks larger than the (granularity-padded) problem.
    block_rows = min(block_rows, _round_up(n_rows, gran))
    return block_rows


# ------------------------------- wrapper -----------------------------------


def cosine_embedding_loss_pallas(pred, label, weight=None, *, margin=0.0,
                                 balance_pos_neg=False, reduction='mean',
                                 avg_factor=None, loss_weight=1.0,
                                 max_block_bytes=2 << 20, compute_dtype=None,
                                 multicore_partials=None):
    """Pallas implementation of CosineEmbeddingLoss.forward (same-shape path).

    pred, label: (N, C) arrays of identical shape (any float/int label dtype).
    weight: optional (N, C) element weights.
    """
    # TODO(synk): _expand_binary_labels / balance_pos_neg path (pred.dim() !=
    # label.dim()) and reduction='none' are not implemented; this kernel covers
    # the same-shape path of the reference module.
    assert pred.shape == label.shape, "same-dim path only"
    assert pred.ndim == 2, "expected (N, C) inputs"
    N, C = pred.shape
    if weight is not None:
        assert weight.shape == pred.shape

    if compute_dtype is None:
        compute_dtype = _default_compute_dtype(pred.dtype)
    if multicore_partials is None:
        multicore_partials = _use_multicore_partials()

    streams = [pred, label] + ([weight] if weight is not None else [])
    itemsizes = [jnp.dtype(x.dtype).itemsize for x in streams]

    # Pad the class axis to a lane-dense multiple of 128 and the row axis to a
    # multiple of the block size.  Padding with (pred=1, label=1, weight=0)
    # contributes exactly 0 to the loss sum for any margin.
    C_pad = _round_up(C, 128)
    block_rows = _pick_block_rows(N, C_pad, itemsizes, max_block_bytes)
    N_pad = _round_up(N, block_rows)
    num_blocks = N_pad // block_rows

    def _pad(x, value):
        if N_pad == N and C_pad == C:
            return x
        return jnp.pad(x, ((0, N_pad - N), (0, C_pad - C)),
                       constant_values=value)

    args = (_pad(pred, 1), _pad(label, 1))
    if weight is not None:
        args = args + (_pad(weight, 0),)

    # NOTE: add pipeline_mode=pl.Buffered(3) here if a trace shows exposed DMA gaps.
    row_spec = pl.BlockSpec((block_rows, C_pad), lambda i: (i, 0))
    in_specs = [row_spec] * len(args)

    if multicore_partials:
        out_shape = jax.ShapeDtypeStruct((num_blocks * 8, C_pad), jnp.float32)
        out_spec = pl.BlockSpec((8, C_pad), lambda i: (i, 0))
        semantics = ("parallel",)
        accumulate = False
    else:
        out_shape = jax.ShapeDtypeStruct((8, C_pad), jnp.float32)
        out_spec = pl.BlockSpec((8, C_pad), lambda i: (0, 0))
        semantics = ("arbitrary",)
        accumulate = True

    if weight is None:
        kernel = functools.partial(_cosine_loss_kernel, margin=float(margin),
                                   compute_dtype=compute_dtype,
                                   accumulate=accumulate)
    else:
        kernel = functools.partial(_cosine_loss_kernel_weighted,
                                   margin=float(margin),
                                   compute_dtype=compute_dtype,
                                   accumulate=accumulate)

    # Explicit VMEM budget: double-buffered input streams + compute temporaries
    # + output buffers, with headroom.  Clamp to [32 MiB, 48 MiB]: safe on v5e
    # (128 MiB physical, 16 MiB scoped default) and within v7x's 64 MiB VMEM.
    in_bytes = sum(2 * block_rows * C_pad * s for s in itemsizes)
    tmp_bytes = 4 * block_rows * C_pad * jnp.dtype(compute_dtype).itemsize
    out_bytes = 2 * 8 * C_pad * 4
    vmem_limit = int(1.5 * (in_bytes + tmp_bytes + out_bytes)) + (1 << 20)
    vmem_limit = int(min(max(vmem_limit, 32 << 20), 48 << 20))

    partials = pl.pallas_call(
        kernel,
        out_shape=out_shape,
        grid_spec=pltpu.PrefetchScalarGridSpec(
            num_scalar_prefetch=0,
            grid=(num_blocks,),
            in_specs=in_specs,
            out_specs=out_spec,
        ),
        compiler_params=pltpu.CompilerParams(
            dimension_semantics=semantics,
            vmem_limit_bytes=vmem_limit),
    )(*args)

    total = jnp.sum(partials)  # tiny (8 or num_blocks*8, C_pad) f32 reduce in XLA

    # weight_reduce_loss semantics (mean / sum, optional avg_factor).
    if avg_factor is None:
        if reduction == 'mean':
            loss = total / jnp.float32(pred.size)
        elif reduction == 'sum':
            loss = total
        else:
            raise NotImplementedError("reduction='none' not supported in this kernel")
    else:
        if reduction == 'mean':
            loss = total / jnp.float32(avg_factor)
        elif reduction == 'sum':
            raise ValueError('avg_factor can not be used with reduction="sum"')
        else:
            raise NotImplementedError("reduction='none' not supported in this kernel")

    return loss_weight * loss


# ------------------------------- reference ---------------------------------


def _reference(pred, label, weight=None, margin=0.0, reduction='mean',
               loss_weight=1.0):
    predf = pred.astype(jnp.float32)
    is_pos = (label == 1)
    loss = jnp.where(is_pos, 1.0 - predf, jnp.maximum(predf - margin, 0.0))
    if weight is not None:
        loss = loss * weight.astype(jnp.float32)
    if reduction == 'mean':
        loss = loss.mean()
    elif reduction == 'sum':
        loss = loss.sum()
    return loss_weight * loss


if __name__ == "__main__":
    key = jax.random.PRNGKey(0)
    k1, k2, k3 = jax.random.split(key, 3)

    margin = 0.1
    loss_weight = 2.0

    # Small (num_samples, num_classes)-style prediction matrix; ragged on
    # purpose so the zero-contribution padding path is exercised.
    N, C = 52, 200
    pred = jax.random.uniform(k1, (N, C), dtype=jnp.float32, minval=-1.0, maxval=1.0)
    label = jnp.where(jax.random.bernoulli(k2, 0.3, (N, C)), 1.0, -1.0).astype(jnp.float32)
    weight = jax.random.uniform(k3, (N, C), dtype=jnp.float32)

    # 1) weighted, reduction='mean', ragged shape, auto layout selection
    out = cosine_embedding_loss_pallas(pred, label, weight, margin=margin,
                                       reduction='mean', loss_weight=loss_weight)
    out = jax.block_until_ready(out)
    ref = _reference(pred, label, weight, margin=margin, reduction='mean',
                     loss_weight=loss_weight)
    assert jnp.allclose(out, ref, rtol=1e-5, atol=1e-6), (out, ref)

    # 2) unweighted, reduction='sum', aligned shape, forced per-block partials
    #    ("parallel" grid) with a tiny block cap to exercise a multi-step grid.
    N2, C2 = 64, 256
    pred2 = jax.random.uniform(k1, (N2, C2), dtype=jnp.float32, minval=-1.0, maxval=1.0)
    label2 = jnp.where(jax.random.bernoulli(k2, 0.3, (N2, C2)), 1.0, -1.0).astype(jnp.float32)
    out2 = cosine_embedding_loss_pallas(pred2, label2, margin=margin,
                                        reduction='sum', loss_weight=1.0,
                                        max_block_bytes=8 * C2 * 4,
                                        multicore_partials=True)
    out2 = jax.block_until_ready(out2)
    ref2 = _reference(pred2, label2, None, margin=margin, reduction='sum',
                      loss_weight=1.0)
    assert jnp.allclose(out2, ref2, rtol=1e-5, atol=1e-3), (out2, ref2)

    # 3) bf16 predictions + int8 labels streamed natively, forced resident
    #    accumulator ("arbitrary" grid) path.
    pred3 = pred2.astype(jnp.bfloat16)
    label3 = jnp.where(jax.random.bernoulli(k2, 0.3, (N2, C2)), 1, -1).astype(jnp.int8)
    out3 = cosine_embedding_loss_pallas(pred3, label3, margin=margin,
                                        reduction='mean', loss_weight=1.0,
                                        multicore_partials=False)
    out3 = jax.block_until_ready(out3)
    ref3 = _reference(pred3, label3, None, margin=margin, reduction='mean',
                      loss_weight=1.0)
    assert jnp.allclose(out3, ref3, rtol=2e-2, atol=1e-3), (out3, ref3)

    print("KERNEL_OK")
</pallas_src>

<mosaic_0001>
module attributes {stable_mosaic.version = 11 : i64} {
  func.func @_cosine_loss_kernel_weighted(%arg0: i32, %arg1: memref<56x256xf32, #tpu.memory_space<vmem>>, %arg2: memref<56x256xf32, #tpu.memory_space<vmem>>, %arg3: memref<56x256xf32, #tpu.memory_space<vmem>>, %arg4: memref<8x256xf32, #tpu.memory_space<vmem>>) attributes {dimension_semantics = [#tpu.dimension_semantics<arbitrary>], iteration_bounds = array<i64: 1>, scalar_prefetch = 0 : i64, scratch_operands = 0 : i64, tpu.core_type = #tpu.core_type<tc>, window_params = [{transform_indices = @transform_0, window_bounds = array<i64: 56, 256>}, {transform_indices = @transform_1, window_bounds = array<i64: 56, 256>}, {transform_indices = @transform_2, window_bounds = array<i64: 56, 256>}, {pipeline_mode = #tpu.pipeline_mode<synchronous>, transform_indices = @transform_3, window_bounds = array<i64: 8, 256>}]} {
    %c0 = arith.constant 0 : index
    %c0_0 = arith.constant 0 : index
    %0 = vector.load %arg1[%c0, %c0_0] : memref<56x256xf32, #tpu.memory_space<vmem>>, vector<56x256xf32>
    %c0_1 = arith.constant 0 : index
    %c0_2 = arith.constant 0 : index
    %1 = vector.load %arg2[%c0_1, %c0_2] : memref<56x256xf32, #tpu.memory_space<vmem>>, vector<56x256xf32>
    %cst = arith.constant 1.000000e+00 : f32
    %2 = vector.broadcast %cst : f32 to vector<56x256xf32>
    %3 = arith.cmpf oeq, %1, %2 : vector<56x256xf32>
    %cst_3 = arith.constant 1.000000e+00 : f32
    %4 = vector.broadcast %cst_3 : f32 to vector<56x256xf32>
    %5 = arith.subf %4, %0 : vector<56x256xf32>
    %cst_4 = arith.constant 1.000000e-01 : f32
    %6 = vector.broadcast %cst_4 : f32 to vector<56x256xf32>
    %7 = arith.subf %0, %6 : vector<56x256xf32>
    %cst_5 = arith.constant 0.000000e+00 : f32
    %8 = vector.broadcast %cst_5 : f32 to vector<56x256xf32>
    %9 = arith.maximumf %7, %8 : vector<56x256xf32>
    %10 = arith.select %3, %5, %9 : vector<56x256xi1>, vector<56x256xf32>
    %c0_6 = arith.constant 0 : index
    %c0_7 = arith.constant 0 : index
    %11 = vector.load %arg3[%c0_6, %c0_7] : memref<56x256xf32, #tpu.memory_space<vmem>>, vector<56x256xf32>
    %12 = arith.mulf %10, %11 : vector<56x256xf32>
    %13 = vector.shape_cast %12 : vector<56x256xf32> to vector<7x8x256xf32>
    %cst_8 = arith.constant dense<0.000000e+00> : vector<8x256xf32>
    %14 = vector.multi_reduction <add>, %13, %cst_8 [0] : vector<7x8x256xf32> to vector<8x256xf32>
    %c0_i32 = arith.constant 0 : i32
    %15 = arith.cmpi eq, %arg0, %c0_i32 : i32
    %16 = arith.extui %15 : i1 to i32
    %c0_i32_9 = arith.constant 0 : i32
    %17 = arith.cmpi ne, %16, %c0_i32_9 : i32
    scf.if %17 {
      %cst_14 = arith.constant 0.000000e+00 : f32
      %21 = vector.broadcast %cst_14 : f32 to vector<8x256xf32>
      %c0_15 = arith.constant 0 : index
      %c0_16 = arith.constant 0 : index
      %22 = vector.load %arg4[%c0_15, %c0_16] : memref<8x256xf32, #tpu.memory_space<vmem>>, vector<8x256xf32>
      tpu.vector_store %arg4[%c0_15, %c0_16], %21 {strides = array<i32>} : memref<8x256xf32, #tpu.memory_space<vmem>>, vector<8x256xf32>,
    } else {
    }
    %c0_10 = arith.constant 0 : index
    %c0_11 = arith.constant 0 : index
    %18 = vector.load %arg4[%c0_10, %c0_11] : memref<8x256xf32, #tpu.memory_space<vmem>>, vector<8x256xf32>
    %19 = arith.addf %18, %14 : vector<8x256xf32>
    %c0_12 = arith.constant 0 : index
    %c0_13 = arith.constant 0 : index
    %20 = vector.load %arg4[%c0_12, %c0_13] : memref<8x256xf32, #tpu.memory_space<vmem>>, vector<8x256xf32>
    tpu.vector_store %arg4[%c0_12, %c0_13], %19 {strides = array<i32>} : memref<8x256xf32, #tpu.memory_space<vmem>>, vector<8x256xf32>,
    return
  }
  func.func @transform_0(%arg0: i32) -> (i32, i32) {
    %c0_i32 = arith.constant 0 : i32
    %c0_i32_0 = arith.constant 0 : i32
    return %arg0, %c0_i32 : i32, i32
  }
  func.func @transform_1(%arg0: i32) -> (i32, i32) {
    %c0_i32 = arith.constant 0 : i32
    %c0_i32_0 = arith.constant 0 : i32
    return %arg0, %c0_i32 : i32, i32
  }
  func.func @transform_2(%arg0: i32) -> (i32, i32) {
    %c0_i32 = arith.constant 0 : i32
    %c0_i32_0 = arith.constant 0 : i32
    return %arg0, %c0_i32 : i32, i32
  }
  func.func @transform_3(%arg0: i32) -> (i32, i32) {
    %c0_i32 = arith.constant 0 : i32
    %c0_i32_0 = arith.constant 0 : i32
    %c0_i32_1 = arith.constant 0 : i32
    return %c0_i32, %c0_i32_0 : i32, i32
  }
}

</mosaic_0001>

<bundles_post_ra>
// kernel: tpu_custom_call.1
= control target key start
LH: loop header
LB: loop body
LE: loop exit
PB: predicated region body
PF: predicated region fallthrough
CT: control target
= control target key end

     0   :  { %8 = vsyncpa [#allocation3], 0  ;;  %s379_s0 = inlined_call_operand.hbm [shape: f32[56,256], index: 0, kind: input, shape index: {}]   ;;  %s380_s1 = inlined_call_operand.hbm [shape: f32[56,256], index: 1, kind: input, shape index: {}]   ;;  %s381_s2 = inlined_call_operand.hbm [shape: f32[56,256], index: 2, kind: input, shape index: {}]   ;;  %s382_s3 = inlined_call_operand.hbm [shape: f32[8,256], index: 3, kind: output, shape index: {}]  }
   0x1   :  { %9 = vsyncpa [#allocation6], 0 }
   0x2   :  { %10 = vsyncpa [#allocation4], 0  ;;  %s329_s12 = smov [#allocation5]   ;;  %s330_s14 = smov [#allocation2]  }
   0x3   :  { %s28_s13 = sshll.u32 %s329_s12, 4  ;;  %s16_s15 = sshll.u32 %s330_s14, 4  ;;  %s29_s13 = int_to_ptr.vmem [resolvable:$true] %s28_s13  ;;  %s17_s15 = int_to_ptr.vmem [resolvable:$true] %s16_s15 }
   0x4   :  { %s251_s16 = scalar_lea.vmem %s29_s13, 1792  ;;  %p256_p1 = scmp.lt.s32.totalorder %s29_s13, %s29_s13 }
   0x5   :  { %p252_p0 = scmp.ne.s32.totalorder %s29_s13, %s251_s16  ;;  %p257_p2 = scmp.lt.s32.totalorder %s251_s16, %s251_s16 }
   0x7   :  { %p258_p3 = por %p257_p2, %p256_p1 }
   0x9   :  { %p259_p4 = pnand %p258_p3, %p252_p0 }
   0xb   :  { %262 = shalt.err (!%p259_p4)
}
   0xc   :  { %s331_s17 = smov 256   ;;  %s332_s18 = smov 16  }
   0xd   :  { %34 = dma.hbm_to_vmem [thread:$0]  %s380_s1, 1792, %s29_s13, [#allocation6], %s331_s17, %s331_s17, %s332_s18  }
   0xe   :  { %s271_s21 = scalar_lea.vmem %s17_s15, 1792  ;;  %p276_p6 = scmp.lt.s32.totalorder %s17_s15, %s17_s15 }
   0xf   :  { %p272_p5 = scmp.ne.s32.totalorder %s17_s15, %s271_s21  ;;  %p277_p7 = scmp.lt.s32.totalorder %s271_s21, %s271_s21 }
  0x11   :  { %p278_p8 = por %p277_p7, %p276_p6 }
  0x13   :  { %p279_p9 = pnand %p278_p8, %p272_p5 }
  0x15   :  { %282 = shalt.err (!%p279_p9)
}
  0x16   :  { %22 = dma.hbm_to_vmem [thread:$0]  %s379_s0, 1792, %s17_s15, [#allocation3], %s331_s17, %s331_s17, %s332_s18  }
  0x17   :  { %s333_s24 = smov [#allocation7]  }
  0x18   :  { %s40_s25 = sshll.u32 %s333_s24, 4  ;;  %s41_s25 = int_to_ptr.vmem [resolvable:$true] %s40_s25 }
  0x19   :  { %s291_s26 = scalar_lea.vmem %s41_s25, 1792  ;;  %p296_p11 = scmp.lt.s32.totalorder %s41_s25, %s41_s25 }
  0x1a   :  { %p292_p10 = scmp.ne.s32.totalorder %s41_s25, %s291_s26  ;;  %p297_p12 = scmp.lt.s32.totalorder %s291_s26, %s291_s26 }
  0x1c   :  { %p298_p13 = por %p297_p12, %p296_p11 }
  0x1e   :  { %p299_p0 = pnand %p298_p13, %p292_p10 }
  0x20   :  { %302 = shalt.err (!%p299_p0)
}
  0x21   :  { %46 = dma.hbm_to_vmem [thread:$0]  %s381_s2, 1792, %s41_s25, [#allocation6], %s331_s17, %s331_s17, %s332_s18  }
  0x22   :  { %323 = dma.done.wait [#allocation3], 1792  }
  0x23   :  { %324 = vsyncadd [#allocation3], 4294965504 }
  0x24   :  { %325 = dma.done.wait [#allocation6], 3584  }
  0x25   :  { %326 = vsyncadd [#allocation6], 4294963712  ;;  %v56_v0 = vld [vmem:[#allocation2] sm:$0xff]  ;;  %v58_v1 = vld [vmem:[#allocation2 + $0x10] sm:$0xff]  ;;  %s334_s0 = smov [#allocation8]  }
  0x26   :  { %v60_v2 = vld [vmem:[#allocation2 + $0x20] sm:$0xff]  ;;  %v62_v3 = vld [vmem:[#allocation2 + $0x30] sm:$0xff]  ;;  %v98_v6 = vsub.f32 1.0, %v56_v0  ;;  %v100_v10 = vsub.f32 1.0, %v58_v1  ;;  %v222_v21 = vadd.f32 -0.1, %v56_v0 }
  0x27   :  { %v64_v4 = vld [vmem:[#allocation2 + $0x40] sm:$0xff]  ;;  %v66_v5 = vld [vmem:[#allocation2 + $0x50] sm:$0xff]  ;;  %v102_v11 = vsub.f32 1.0, %v60_v2  ;;  %v104_v12 = vsub.f32 1.0, %v62_v3  ;;  %v224_v22 = vadd.f32 -0.1, %v58_v1 }
  0x28   :  { %v68_v7 = vld [vmem:[#allocation2 + $0x60] sm:$0xff]  ;;  %v70_v8 = vld [vmem:[#allocation5] sm:$0xff]  ;;  %v106_v16 = vsub.f32 1.0, %v64_v4  ;;  %v108_v17 = vsub.f32 1.0, %v66_v5  ;;  %v226_v24 = vadd.f32 -0.1, %v60_v2 }
  0x29   :  { %v72_v9 = vld [vmem:[#allocation5 + $0x10] sm:$0xff]  ;;  %v74_v13 = vld [vmem:[#allocation5 + $0x20] sm:$0xff]  ;;  %vm84_vm0 = vcmp.eq.f32.partialorder %v70_v8, 1.0  ;;  %v110_v20 = vsub.f32 1.0, %v68_v7  ;;  %v228_v25 = vadd.f32 -0.1, %v62_v3 }
  0x2a   :  { %v76_v14 = vld [vmem:[#allocation5 + $0x30] sm:$0xff]  ;;  %v78_v15 = vld [vmem:[#allocation5 + $0x40] sm:$0xff]  ;;  %vm86_vm1 = vcmp.eq.f32.partialorder %v72_v9, 1.0  ;;  %vm88_vm2 = vcmp.eq.f32.partialorder %v74_v13, 1.0  ;;  %v230_v26 = vadd.f32 -0.1, %v64_v4 }
  0x2b   :  { %v80_v18 = vld [vmem:[#allocation5 + $0x50] sm:$0xff]  ;;  %v82_v19 = vld [vmem:[#allocation5 + $0x60] sm:$0xff]  ;;  %vm90_vm3 = vcmp.eq.f32.partialorder %v76_v14, 1.0  ;;  %vm92_vm4 = vcmp.eq.f32.partialorder %v78_v15, 1.0  ;;  %v232_v27 = vadd.f32 -0.1, %v66_v5 }
  0x2c   :  { %v154_v23 = vld [vmem:[#allocation7] sm:$0xff]  ;;  %v234_v28 = vadd.f32 -0.1, %v68_v7  ;;  %v126_v29 = vmax.f32 %v222_v21, 0.0  ;;  %v128_v30 = vmax.f32 %v224_v22, 0.0  ;;  %vm94_vm5 = vcmp.eq.f32.partialorder %v80_v18, 1.0 }
  0x2d   :  { %v130_v31 = vmax.f32 %v226_v24, 0.0  ;;  %v132_v32 = vmax.f32 %v228_v25, 0.0  ;;  %v134_v33 = vmax.f32 %v230_v26, 0.0  ;;  %v156_v34 = vld [vmem:[#allocation7 + $0x10] sm:$0xff]  ;;  %v158_v35 = vld [vmem:[#allocation7 + $0x20] sm:$0xff]  ;;  %vm96_vm6 = vcmp.eq.f32.partialorder %v82_v19, 1.0 }
  0x2e   :  { %v136_v36 = vmax.f32 %v232_v27, 0.0  ;;  %v140_v37 = vsel %vm84_vm0, %v98_v6, %v126_v29  ;;  %v142_v38 = vsel %vm86_vm1, %v100_v10, %v128_v30  ;;  %v138_v39 = vmax.f32 %v234_v28, 0.0  ;;  %v160_v42 = vld [vmem:[#allocation7 + $0x30] sm:$0xff]  ;;  %v162_v46 = vld [vmem:[#allocation7 + $0x40] sm:$0xff]  ;;  %v71_v50 = vld [vmem:[#allocation5 + $0x8] sm:$0xff]  ;;  %s212_s2 = sshll.u32 %s334_s0, 4  ;;  %s213_s2 = int_to_ptr.vmem [resolvable:$true] %s212_s2 }
  0x2f   :  { %v144_v40 = vsel %vm88_vm2, %v102_v11, %v130_v31  ;;  %v146_v41 = vsel %vm90_vm3, %v104_v12, %v132_v32  ;;  %v168_v43 = vmul.f32 %v154_v23, %v140_v37  ;;  %v148_v44 = vsel %vm92_vm4, %v106_v16, %v134_v33  ;;  %v164_v47 = vld [vmem:[#allocation7 + $0x50] sm:$0xff]  ;;  %v73_v51 = vld [vmem:[#allocation5 + $0x18] sm:$0xff]  ;;  %v166_v52 = vld [vmem:[#allocation7 + $0x60] sm:$0xff]  ;;  %s303_s28 = scalar_lea.vmem %s213_s2, 256  ;;  %p308_p2 = scmp.lt.s32.totalorder %s213_s2, %s213_s2 }
  0x30   :  { %v150_v45 = vsel %vm94_vm5, %v108_v17, %v136_v36  ;;  %v170_v48 = vmul.f32 %v156_v34, %v142_v38  ;;  %v172_v49 = vmul.f32 %v158_v35, %v144_v40  ;;  %v174_v53 = vmul.f32 %v160_v42, %v146_v41  ;;  %v75_v55 = vld [vmem:[#allocation5 + $0x28] sm:$0xff]  ;;  %v77_v56 = vld [vmem:[#allocation5 + $0x38] sm:$0xff]  ;;  %p304_p1 = scmp.ne.s32.totalorder %s213_s2, %s303_s28  ;;  %p309_p3 = scmp.lt.s32.totalorder %s303_s28, %s303_s28 }
  0x31   :  { %v152_v57 = vsel %vm96_vm6, %v110_v20, %v138_v39  ;;  %v176_v58 = vmul.f32 %v162_v46, %v148_v44  ;;  %v178_v59 = vmul.f32 %v164_v47, %v150_v45  ;;  %v57_v60 = vld [vmem:[#allocation2 + $0x8] sm:$0xff]  ;;  %v59_v61 = vld [vmem:[#allocation2 + $0x18] sm:$0xff]  ;;  %vm85_vm7 = vcmp.eq.f32.partialorder %v71_v50, 1.0 }
  0x32   :  { %v182_v54 = vadd.f32 %v170_v48, %v168_v43  ;;  %v61_v62 = vld [vmem:[#allocation2 + $0x28] sm:$0xff]  ;;  %v63_v0 = vld [vmem:[#allocation2 + $0x38] sm:$0xff]  ;;  %vm87_vm8 = vcmp.eq.f32.partialorder %v73_v51, 1.0  ;;  %vm89_vm9 = vcmp.eq.f32.partialorder %v75_v55, 1.0  ;;  %v99_v3 = vsub.f32 1.0, %v57_v60  ;;  %p310_p4 = por %p309_p3, %p308_p2 }
  0x33   :  { %v65_v1 = vld [vmem:[#allocation2 + $0x48] sm:$0xff]  ;;  %v67_v2 = vld [vmem:[#allocation2 + $0x58] sm:$0xff]  ;;  %vm91_vm10 = vcmp.eq.f32.partialorder %v77_v56, 1.0  ;;  %v101_v6 = vsub.f32 1.0, %v59_v61  ;;  %v103_v7 = vsub.f32 1.0, %v61_v62  ;;  %v105_v8 = vsub.f32 1.0, %v63_v0 }
  0x34   :  { %v183_v63 = vadd.f32 %v182_v54, %v172_v49  ;;  %v69_v4 = vld [vmem:[#allocation2 + $0x68] sm:$0xff]  ;;  %v79_v5 = vld [vmem:[#allocation5 + $0x48] sm:$0xff]  ;;  %v223_v10 = vadd.f32 -0.1, %v57_v60  ;;  %v225_v11 = vadd.f32 -0.1, %v59_v61  ;;  %v180_v13 = vmul.f32 %v166_v52, %v152_v57  ;;  %p311_p5 = pnand %p310_p4, %p304_p1 }
  0x35   :  { %v227_v12 = vadd.f32 -0.1, %v61_v62  ;;  %v229_v14 = vadd.f32 -0.1, %v63_v0  ;;  %v231_v15 = vadd.f32 -0.1, %v65_v1 }
  0x36   :  { %v184_v9 = vadd.f32 %v183_v63, %v174_v53  ;;  %v233_v16 = vadd.f32 -0.1, %v67_v2  ;;  %v81_v18 = vld [vmem:[#allocation5 + $0x58] sm:$0xff]  ;;  %v107_v19 = vsub.f32 1.0, %v65_v1  ;;  %v127_v20 = vmax.f32 %v223_v10, 0.0  ;;  %v157_v27 = vld [vmem:[#allocation7 + $0x18] sm:$0xff] }
  0x37   :  { %v129_v21 = vmax.f32 %v225_v11, 0.0  ;;  %v155_v22 = vld [vmem:[#allocation7 + $0x8] sm:$0xff]  ;;  %v235_v23 = vadd.f32 -0.1, %v69_v4  ;;  %v131_v24 = vmax.f32 %v227_v12, 0.0  ;;  %v133_v25 = vmax.f32 %v229_v14, 0.0 }
  0x38   :  { %v185_v17 = vadd.f32 %v184_v9, %v176_v58  ;;  %v135_v26 = vmax.f32 %v231_v15, 0.0  ;;  %vm93_vm11 = vcmp.eq.f32.partialorder %v79_v5, 1.0  ;;  %v141_v29 = vsel %vm85_vm7, %v99_v3, %v127_v20  ;;  %v159_v31 = vld [vmem:[#allocation7 + $0x28] sm:$0xff]  ;;  %v83_v32 = vld [vmem:[#allocation5 + $0x68] sm:$0xff] }
  0x39   :  { %v143_v30 = vsel %vm87_vm8, %v101_v6, %v129_v21  ;;  %v109_v33 = vsub.f32 1.0, %v67_v2  ;;  %v137_v34 = vmax.f32 %v233_v16, 0.0  ;;  %v145_v35 = vsel %vm89_vm9, %v103_v7, %v131_v24  ;;  %v161_v37 = vld [vmem:[#allocation7 + $0x38] sm:$0xff]  ;;  %v163_v44 = vld [vmem:[#allocation7 + $0x48] sm:$0xff] }
  0x3a   :  { %v186_v28 = vadd.f32 %v185_v17, %v178_v59  ;;  %v147_v36 = vsel %vm91_vm10, %v105_v8, %v133_v25  ;;  %vm95_vm12 = vcmp.eq.f32.partialorder %v81_v18, 1.0  ;;  %v169_v39 = vmul.f32 %v155_v22, %v141_v29  ;;  %v165_v49 = vld [vmem:[#allocation7 + $0x58] sm:$0xff]  ;;  %v167_v53 = vld [vmem:[#allocation7 + $0x68] sm:$0xff] }
  0x3b   :  { %v171_v40 = vmul.f32 %v157_v27, %v143_v30  ;;  %v111_v41 = vsub.f32 1.0, %v69_v4  ;;  %v139_v42 = vmax.f32 %v235_v23, 0.0  ;;  %v149_v43 = vsel %vm93_vm11, %v107_v19, %v135_v26 }
  0x3c   :  { %v187_v38 = vadd.f32 %v186_v28, %v180_v13  ;;  %v173_v45 = vmul.f32 %v159_v31, %v145_v35  ;;  %vm97_vm13 = vcmp.eq.f32.partialorder %v83_v32, 1.0  ;;  %v175_v46 = vmul.f32 %v161_v37, %v147_v36 }
  0x3d   :  { %v188_v47 = vadd.f32 %v171_v40, %v169_v39  ;;  %v151_v48 = vsel %vm95_vm12, %v109_v33, %v137_v34  ;;  %v177_v50 = vmul.f32 %v163_v44, %v149_v43  ;;  %v153_v52 = vsel %vm97_vm13, %v111_v41, %v139_v42 }
  0x3e   :  { %204 = vst [vmem:[#allocation8] sm:$0xff] %v187_v38  ;;  %v179_v54 = vmul.f32 %v165_v49, %v151_v48  ;;  %v181_v56 = vmul.f32 %v167_v53, %v153_v52 }
  0x3f   :  { %v189_v51 = vadd.f32 %v188_v47, %v173_v45 }
  0x41   :  { %v190_v55 = vadd.f32 %v189_v51, %v175_v46 }
  0x43   :  { %v191_v57 = vadd.f32 %v190_v55, %v177_v50 }
  0x45   :  { %v192_v58 = vadd.f32 %v191_v57, %v179_v54 }
  0x47   :  { %v193_v59 = vadd.f32 %v192_v58, %v181_v56 }
  0x49   :  { %205 = vst [vmem:[#allocation8 + $0x8] sm:$0xff] %v193_v59 }
  0x4a   :  { %314 = shalt.err (!%p311_p5)
}
  0x4b   :  { %215 = dma.vmem_to_hbm [thread:$0]  %s213_s2, 256, %s382_s3, [#allocation4]  }
  0x4c   :  { %327 = dma.done.wait [#allocation4], 256  }
  0x4d   :  { %328 = vsyncadd [#allocation4], 4294967040 }
  0x4e   :  { %219 = vsyncpa [#allocation3], 1 }
  0x4f   :  { %220 = vsyncpa [#allocation6], 1 }
  0x50   :  { %221 = vsyncpa [#allocation4], 1 }

</bundles_post_ra>
